<compile_context>
chip_gen: v5e
topology: v5e:2x2
jax: 0.10.0
libtpu: 0.0.40
codegen_flags: <defaults>
</compile_context>

<pallas_src>
import functools

import jax
import jax.numpy as jnp
from jax.experimental import pallas as pl
from jax.experimental.pallas import tpu as pltpu


def _round_up(x, m):
    return ((x + m - 1) // m) * m


def _vmem_capacity_bytes():
    try:
        return int(pltpu.get_tpu_info().vmem_capacity_bytes)
    except Exception:
        return 64 * 1024 * 1024  # v7x per-core figure: safe lower bound


# ----------------------------- Pallas kernel ------------------------------ #

def _kgram_mlp_kernel(ids_ref, w1_ref, b1_ref, *rest, vocab_size):
    """One (row-tile, vocab-tile) grid step.

    ids_ref : (tile_m, k) int32            previous-k token ids (oldest first)
    w1_ref  : (kV_pad, E_pad) bf16         fused first-layer weights
    b1_ref  : (1, E_pad) bf16
    rest    : [w_in (L,E_pad,E_pad), b_in (L,1,E_pad),]
              w2 (E_pad, tile_v) bf16, b2 (1, tile_v) bf16,
              o_ref (tile_m, tile_v), h_ref (tile_m, E_pad) bf16 scratch
    """
    if len(rest) == 6:
        win_ref, bin_ref, w2_ref, b2_ref, o_ref, h_ref = rest
    else:
        win_ref = bin_ref = None
        w2_ref, b2_ref, o_ref, h_ref = rest

    tm, k = ids_ref.shape
    kv_pad = w1_ref.shape[0]

    # Hidden activations only depend on the row tile: compute them once at the
    # first vocab block and cache in VMEM scratch for the remaining v-blocks.
    @pl.when(pl.program_id(1) == 0)
    def _compute_hidden():
        ids = ids_ref[...]                                          # (tm, k)
        iota_kv = jax.lax.broadcasted_iota(jnp.int32, (tm, kv_pad), 1)
        # Single (tm, kV_pad) one-hot with offset targets ids[:,j] + j*V.
        match = iota_kv == ids[:, 0:1]
        for j in range(1, k):
            match = jnp.logical_or(
                match, iota_kv == ids[:, j:j + 1] + j * vocab_size)
        oh = match.astype(jnp.bfloat16)                             # 0/1 exact
        # One deep-K MXU matmul == embedding gather for the fused first layer.
        h = jnp.dot(oh, w1_ref[...], preferred_element_type=jnp.float32)
        h = jnp.maximum(h + b1_ref[...].astype(jnp.float32), 0.0)

        if win_ref is not None:
            for l in range(win_ref.shape[0]):
                z = jnp.dot(h.astype(jnp.bfloat16), win_ref[l],
                            preferred_element_type=jnp.float32)
                h = jnp.maximum(z + bin_ref[l].astype(jnp.float32), 0.0)

        h_ref[...] = h.astype(jnp.bfloat16)

    # Output head for this vocab tile: lane-dense store.
    out = jnp.dot(h_ref[...], w2_ref[...], preferred_element_type=jnp.float32)
    o_ref[...] = (out + b2_ref[...].astype(jnp.float32)).astype(o_ref.dtype)


def kgram_mlp_pallas(ctx_ids, w1, b1, w_in, b_in, w2, b2, *, vocab_size,
                     tile_m=512, tile_v=512, out_dtype=jnp.float32):
    """ctx_ids: (N, k) int32 context ids.  Returns (N, V_pad) logits."""
    n, k = ctx_ids.shape
    kv_pad, e_pad = w1.shape
    v_pad = w2.shape[1]

    tile_v = min(tile_v, v_pad)
    assert v_pad % tile_v == 0, (v_pad, tile_v)
    num_v_blocks = v_pad // tile_v

    # Big row tiles, but keep >= 2 row blocks so the 'parallel' axis can shard
    # across v7x's two TensorCores; always respect the 8-sublane minimum.
    tile_m = max(8, _round_up(min(tile_m, n), 8))
    if n > 8 and (n + tile_m - 1) // tile_m < 2:
        tile_m = max(8, _round_up((n + 1) // 2, 8))
    n_pad = _round_up(n, tile_m)
    if n_pad != n:
        ctx_ids = jnp.pad(ctx_ids, ((0, n_pad - n), (0, 0)))  # pad id 0 valid

    num_inner = 0 if w_in is None else w_in.shape[0]
    out_itemsize = jnp.dtype(out_dtype).itemsize

    # Advisory cost estimate so XLA overlaps surrounding gather/slices.
    flops = 2 * n_pad * (kv_pad * e_pad + num_inner * e_pad * e_pad
                         + e_pad * v_pad)
    weight_bytes = sum(int(x.size) * x.dtype.itemsize
                       for x in (w1, b1, w2, b2)
                       + ((w_in, b_in) if w_in is not None else ()))
    bytes_accessed = n_pad * k * 4 + n_pad * v_pad * out_itemsize + weight_bytes
    cost = pl.CostEstimate(flops=int(flops), transcendentals=0,
                           bytes_accessed=int(bytes_accessed))

    # VMEM budget: resident weights + per-block W2/b2 + double-buffered
    # ids/out tiles + hidden scratch + headroom, capped at 85% of the per-core
    # physical capacity (so a v7x core never gets the full 64 MiB).
    resident = (int(w1.size) + int(b1.size)) * 2
    if w_in is not None:
        resident += (int(w_in.size) + int(b_in.size)) * 2
    w2_bytes = (e_pad * tile_v + tile_v) * 2 * (1 if num_v_blocks == 1 else 2)
    io_bytes = 2 * (tile_m * k * 4 + tile_m * tile_v * out_itemsize)
    scratch_bytes = tile_m * e_pad * 2
    needed = 2 * resident + w2_bytes + io_bytes + scratch_bytes  # conservative
    vmem_limit = min(int(0.85 * _vmem_capacity_bytes()),
                     max(needed + (16 << 20), 64 << 20))

    def build_and_run(single_buffer_weights):
        def const_spec(shape, index_map):
            # Grid-invariant operands: single-buffer to halve their VMEM.
            if single_buffer_weights:
                return pl.BlockSpec(shape, index_map,
                                    pipeline_mode=pl.Buffered(1))
            return pl.BlockSpec(shape, index_map)

        in_specs = [
            pl.BlockSpec((tile_m, k), lambda i, j: (i, 0)),          # ids
            const_spec((kv_pad, e_pad), lambda i, j: (0, 0)),        # W1
            const_spec((1, e_pad), lambda i, j: (0, 0)),             # b1
        ]
        args = [ctx_ids, w1, b1]
        if w_in is not None:
            in_specs += [
                const_spec((num_inner, e_pad, e_pad), lambda i, j: (0, 0, 0)),
                const_spec((num_inner, 1, e_pad), lambda i, j: (0, 0, 0)),
            ]
            args += [w_in, b_in]
        # W2/b2 vary along the vocab grid axis unless there is a single block.
        head_spec = const_spec if num_v_blocks == 1 else pl.BlockSpec
        in_specs += [
            head_spec((e_pad, tile_v), lambda i, j: (0, j)),         # W2
            head_spec((1, tile_v), lambda i, j: (0, j)),             # b2
        ]
        args += [w2, b2]

        kernel = functools.partial(_kgram_mlp_kernel, vocab_size=vocab_size)
        return pl.pallas_call(
            kernel,
            out_shape=jax.ShapeDtypeStruct((n_pad, v_pad), out_dtype),
            grid_spec=pltpu.PrefetchScalarGridSpec(
                num_scalar_prefetch=0,
                grid=(n_pad // tile_m, num_v_blocks),
                in_specs=in_specs,
                out_specs=pl.BlockSpec((tile_m, tile_v), lambda i, j: (i, j)),
                scratch_shapes=[pltpu.VMEM((tile_m, e_pad), jnp.bfloat16)],
            ),
            compiler_params=pltpu.CompilerParams(
                dimension_semantics=("parallel", "arbitrary"),
                vmem_limit_bytes=int(vmem_limit),
            ),
            cost_estimate=cost,
        )(*args)

    try:
        out = jax.block_until_ready(build_and_run(True))
    except Exception:
        # Fallback if single-buffered specs (pl.Buffered(1)) are unsupported
        # by the installed JAX/Mosaic version; kernel is otherwise identical.
        out = build_and_run(False)
    return out[:n]


# ------------------------------ JAX glue ----------------------------------- #

def build_context_ids(tokens_seq, k):
    """(seq_len, batch) int32 -> (seq_len*batch, k) int32 context ids.

    Row ordering is t*batch + b (time-major), matching the torch output
    ordering.  For t < k the context is left-padded with token id 0, oldest
    token first — exactly like the torch module.
    """
    seq_len, batch = tokens_seq.shape
    padded = jnp.concatenate(
        [jnp.zeros((k, batch), dtype=tokens_seq.dtype), tokens_seq], axis=0)
    idx = jnp.arange(seq_len)[:, None] + jnp.arange(k)[None, :]   # (S, k)
    ctx = jnp.transpose(padded[idx], (0, 2, 1))                   # (S, B, k)
    return ctx.reshape(seq_len * batch, k)


class KGramMLPSeqModelPallas:
    def __init__(self, vocab_size, k=3, embed_size=32, num_inner_layers=1,
                 chunk_size=1, tile_v=512, seed=0):
        self.k = k
        self.vocab_size = vocab_size
        self.embed_size = embed_size
        self.num_inner_layers = num_inner_layers
        self.chunk_size = chunk_size  # kernel processes all positions at once

        self.e_pad = _round_up(embed_size, 128)
        self.tile_v = min(_round_up(tile_v, 128), _round_up(vocab_size, 128))
        self.v_pad = _round_up(vocab_size, self.tile_v)
        kv = k * vocab_size
        self.kv_pad = _round_up(kv, 128)

        key = jax.random.PRNGKey(seed)
        k1, k2, k3, k4, k5, k6 = jax.random.split(key, 6)
        scale1 = kv ** -0.5
        scale_e = embed_size ** -0.5

        def pad2(x, r, c):
            return jnp.pad(x, ((0, r - x.shape[0]), (0, c - x.shape[1])))

        # Canonical parameters, stored zero-padded + bf16 (exact for the
        # un-padded output slice).  W1 is stored flattened (kV_pad, E_pad) so
        # the kernel can do a single deep-K one-hot matmul.
        w1 = jax.random.normal(k1, (kv, embed_size), jnp.float32) * scale1
        self.w1 = pad2(w1, self.kv_pad, self.e_pad).astype(jnp.bfloat16)

        b1 = jax.random.normal(k2, (1, embed_size), jnp.float32) * 0.01
        self.b1 = pad2(b1, 1, self.e_pad).astype(jnp.bfloat16)

        if num_inner_layers > 0:
            w_in = jax.random.normal(
                k3, (num_inner_layers, embed_size, embed_size),
                jnp.float32) * scale_e
            w_in = jnp.pad(w_in, ((0, 0), (0, self.e_pad - embed_size),
                                  (0, self.e_pad - embed_size)))
            self.w_in = w_in.astype(jnp.bfloat16)                 # (L, Ep, Ep)
            b_in = jax.random.normal(
                k4, (num_inner_layers, 1, embed_size), jnp.float32) * 0.01
            b_in = jnp.pad(b_in, ((0, 0), (0, 0),
                                  (0, self.e_pad - embed_size)))
            self.b_in = b_in.astype(jnp.bfloat16)                 # (L, 1, Ep)
        else:
            self.w_in = None
            self.b_in = None

        w2 = jax.random.normal(k5, (embed_size, vocab_size),
                               jnp.float32) * scale_e
        self.w2 = pad2(w2, self.e_pad, self.v_pad).astype(jnp.bfloat16)
        b2 = jax.random.normal(k6, (1, vocab_size), jnp.float32) * 0.01
        self.b2 = pad2(b2, 1, self.v_pad).astype(jnp.bfloat16)

    def __call__(self, tokens_seq, tile_m=512, out_dtype=jnp.float32):
        seq_len, batch = tokens_seq.shape
        ctx_ids = build_context_ids(tokens_seq, self.k)           # (N, k) i32
        logits = kgram_mlp_pallas(
            ctx_ids, self.w1, self.b1, self.w_in, self.b_in, self.w2, self.b2,
            vocab_size=self.vocab_size, tile_m=tile_m, tile_v=self.tile_v,
            out_dtype=out_dtype)
        return logits[:, :self.vocab_size].reshape(
            seq_len, batch, self.vocab_size)

    # pure-JAX reference (same parameters, same bf16-operand math)
    def reference(self, tokens_seq):
        seq_len, batch = tokens_seq.shape
        ctx = build_context_ids(tokens_seq, self.k)               # (N, k)
        w1f = self.w1.astype(jnp.float32)                         # (kVp, Ep)
        h = jnp.broadcast_to(self.b1.astype(jnp.float32),
                             (ctx.shape[0], self.e_pad))
        for j in range(self.k):
            h = h + w1f[ctx[:, j] + j * self.vocab_size]          # row gather
        h = jnp.maximum(h, 0.0)
        for l in range(self.num_inner_layers):
            z = jnp.dot(h.astype(jnp.bfloat16), self.w_in[l],
                        preferred_element_type=jnp.float32)
            h = jnp.maximum(z + self.b_in[l].astype(jnp.float32), 0.0)
        out = jnp.dot(h.astype(jnp.bfloat16), self.w2,
                      preferred_element_type=jnp.float32)
        out = out + self.b2.astype(jnp.float32)
        return out[:, :self.vocab_size].reshape(
            seq_len, batch, self.vocab_size)


# -------------------------------- main ------------------------------------- #

if __name__ == "__main__":
    configs = [
        # standard path: small vocab, inner layer, f32 output, single v-block
        dict(vocab_size=16, num_inner_layers=1, seq_len=8, batch=4,
             out_dtype=jnp.float32, tile_v=512),
        # ragged N, no inner layer, bf16 output store (HBM-traffic variant)
        dict(vocab_size=16, num_inner_layers=0, seq_len=7, batch=3,
             out_dtype=jnp.bfloat16, tile_v=512),
        # vocab-tiled output head (multiple v-blocks, hidden cached in scratch)
        dict(vocab_size=300, num_inner_layers=1, seq_len=8, batch=4,
             out_dtype=jnp.float32, tile_v=128),
    ]

    key = jax.random.PRNGKey(0)
    for cfg in configs:
        key, sub = jax.random.split(key)
        tokens_seq = jax.random.randint(
            sub, (cfg["seq_len"], cfg["batch"]), 0, cfg["vocab_size"],
            dtype=jnp.int32)

        model = KGramMLPSeqModelPallas(
            cfg["vocab_size"], k=3, embed_size=32,
            num_inner_layers=cfg["num_inner_layers"],
            tile_v=cfg["tile_v"], seed=0)

        out = jax.block_until_ready(model(tokens_seq,
                                          out_dtype=cfg["out_dtype"]))
        assert out.shape == (cfg["seq_len"], cfg["batch"],
                             cfg["vocab_size"]), out.shape

        ref = jax.block_until_ready(model.reference(tokens_seq))
        max_err = float(jnp.max(jnp.abs(out.astype(jnp.float32) - ref)))
        assert max_err < 2e-2, max_err

    print("KERNEL_OK")
</pallas_src>

<mosaic_0001>
module attributes {stable_mosaic.version = 11 : i64} {
  func.func @_kgram_mlp_kernel(%arg0: i32, %arg1: i32, %arg2: memref<16x3xi32, #tpu.memory_space<vmem>>, %arg3: memref<128x128xbf16, #tpu.memory_space<vmem>>, %arg4: memref<1x128xbf16, #tpu.memory_space<vmem>>, %arg5: memref<1x128x128xbf16, #tpu.memory_space<vmem>>, %arg6: memref<1x1x128xbf16, #tpu.memory_space<vmem>>, %arg7: memref<128x128xbf16, #tpu.memory_space<vmem>>, %arg8: memref<1x128xbf16, #tpu.memory_space<vmem>>, %arg9: memref<16x128xf32, #tpu.memory_space<vmem>>, %arg10: memref<16x128xbf16, #tpu.memory_space<vmem>>) attributes {dimension_semantics = [#tpu.dimension_semantics<parallel>, #tpu.dimension_semantics<arbitrary>], iteration_bounds = array<i64: 2, 1>, scalar_prefetch = 0 : i64, scratch_operands = 1 : i64, tpu.core_type = #tpu.core_type<tc>, window_params = [{transform_indices = @transform_0, window_bounds = array<i64: 16, 3>}, {pipeline_mode = #tpu.pipeline_mode<synchronous>, transform_indices = @transform_1, window_bounds = array<i64: 128, 128>}, {pipeline_mode = #tpu.pipeline_mode<synchronous>, transform_indices = @transform_2, window_bounds = array<i64: 1, 128>}, {pipeline_mode = #tpu.pipeline_mode<synchronous>, transform_indices = @transform_3, window_bounds = array<i64: 1, 128, 128>}, {pipeline_mode = #tpu.pipeline_mode<synchronous>, transform_indices = @transform_4, window_bounds = array<i64: 1, 1, 128>}, {pipeline_mode = #tpu.pipeline_mode<synchronous>, transform_indices = @transform_5, window_bounds = array<i64: 128, 128>}, {pipeline_mode = #tpu.pipeline_mode<synchronous>, transform_indices = @transform_6, window_bounds = array<i64: 1, 128>}, {transform_indices = @transform_7, window_bounds = array<i64: 16, 128>}]} {
    %c0_i32 = arith.constant 0 : i32
    %0 = arith.cmpi eq, %arg1, %c0_i32 : i32
    %1 = arith.extui %0 : i1 to i32
    %c0_i32_0 = arith.constant 0 : i32
    %2 = arith.cmpi ne, %1, %c0_i32_0 : i32
    scf.if %2 {
      %c0_8 = arith.constant 0 : index
      %c0_9 = arith.constant 0 : index
      %11 = vector.load %arg2[%c0_8, %c0_9] : memref<16x3xi32, #tpu.memory_space<vmem>>, vector<16x3xi32>
      %12 = tpu.iota {dimensions = array<i32: 1>} : vector<16x128xi32>
      %13 = vector.extract_strided_slice %11 {offsets = [0, 0], sizes = [16, 1], strides = [1, 1]} : vector<16x3xi32> to vector<16x1xi32>
      %14 = vector.broadcast %13 : vector<16x1xi32> to vector<16x128xi32>
      %15 = arith.cmpi eq, %12, %14 : vector<16x128xi32>
      %16 = vector.extract_strided_slice %11 {offsets = [0, 1], sizes = [16, 1], strides = [1, 1]} : vector<16x3xi32> to vector<16x1xi32>
      %c16_i32 = arith.constant 16 : i32
      %17 = vector.broadcast %c16_i32 : i32 to vector<16x1xi32>
      %18 = arith.addi %16, %17 : vector<16x1xi32>
      %19 = vector.broadcast %18 : vector<16x1xi32> to vector<16x128xi32>
      %20 = arith.cmpi eq, %12, %19 : vector<16x128xi32>
      %21 = arith.ori %15, %20 : vector<16x128xi1>
      %22 = vector.extract_strided_slice %11 {offsets = [0, 2], sizes = [16, 1], strides = [1, 1]} : vector<16x3xi32> to vector<16x1xi32>
      %c32_i32 = arith.constant 32 : i32
      %23 = vector.broadcast %c32_i32 : i32 to vector<16x1xi32>
      %24 = arith.addi %22, %23 : vector<16x1xi32>
      %25 = vector.broadcast %24 : vector<16x1xi32> to vector<16x128xi32>
      %26 = arith.cmpi eq, %12, %25 : vector<16x128xi32>
      %27 = arith.ori %21, %26 : vector<16x128xi1>
      %28 = arith.extui %27 : vector<16x128xi1> to vector<16x128xi32>
      %29 = arith.sitofp %28 : vector<16x128xi32> to vector<16x128xf32>
      %30 = arith.truncf %29 : vector<16x128xf32> to vector<16x128xbf16>
      %c0_10 = arith.constant 0 : index
      %c0_11 = arith.constant 0 : index
      %31 = vector.load %arg3[%c0_10, %c0_11] : memref<128x128xbf16, #tpu.memory_space<vmem>>, vector<128x128xbf16>
      %cst_12 = arith.constant dense<0.000000e+00> : vector<16x128xf32>
      %32 = tpu.matmul %30, %31, %cst_12 {dimension_numbers = #tpu.dot_dimension_numbers<[1], [0], [0], [1], [0, 0, 1, 1], [], []>} : vector<16x128xbf16>, vector<128x128xbf16>, vector<16x128xf32> -> vector<16x128xf32>
      %c0_13 = arith.constant 0 : index
      %c0_14 = arith.constant 0 : index
      %33 = vector.load %arg4[%c0_13, %c0_14] : memref<1x128xbf16, #tpu.memory_space<vmem>>, vector<1x128xbf16>
      %34 = arith.extf %33 : vector<1x128xbf16> to vector<1x128xf32>
      %35 = vector.broadcast %34 : vector<1x128xf32> to vector<16x128xf32>
      %36 = arith.addf %32, %35 : vector<16x128xf32>
      %cst_15 = arith.constant 0.000000e+00 : f32
      %37 = vector.broadcast %cst_15 : f32 to vector<16x128xf32>
      %38 = arith.maximumf %36, %37 : vector<16x128xf32>
      %39 = arith.truncf %38 : vector<16x128xf32> to vector<16x128xbf16>
      %c0_16 = arith.constant 0 : index
      %c0_17 = arith.constant 0 : index
      %c0_18 = arith.constant 0 : index
      %40 = vector.load %arg5[%c0_16, %c0_17, %c0_18] : memref<1x128x128xbf16, #tpu.memory_space<vmem>>, vector<1x128x128xbf16>
      %41 = vector.shape_cast %40 : vector<1x128x128xbf16> to vector<128x128xbf16>
      %cst_19 = arith.constant dense<0.000000e+00> : vector<16x128xf32>
      %42 = tpu.matmul %39, %41, %cst_19 {dimension_numbers = #tpu.dot_dimension_numbers<[1], [0], [0], [1], [0, 0, 1, 1], [], []>} : vector<16x128xbf16>, vector<128x128xbf16>, vector<16x128xf32> -> vector<16x128xf32>
      %c0_20 = arith.constant 0 : index
      %c0_21 = arith.constant 0 : index
      %c0_22 = arith.constant 0 : index
      %43 = vector.load %arg6[%c0_20, %c0_21, %c0_22] : memref<1x1x128xbf16, #tpu.memory_space<vmem>>, vector<1x1x128xbf16>
      %44 = vector.shape_cast %43 : vector<1x1x128xbf16> to vector<1x128xbf16>
      %45 = arith.extf %44 : vector<1x128xbf16> to vector<1x128xf32>
      %46 = vector.broadcast %45 : vector<1x128xf32> to vector<16x128xf32>
      %47 = arith.addf %42, %46 : vector<16x128xf32>
      %cst_23 = arith.constant 0.000000e+00 : f32
      %48 = vector.broadcast %cst_23 : f32 to vector<16x128xf32>
      %49 = arith.maximumf %47, %48 : vector<16x128xf32>
      %50 = arith.truncf %49 : vector<16x128xf32> to vector<16x128xbf16>
      %c0_24 = arith.constant 0 : index
      %c0_25 = arith.constant 0 : index
      %51 = vector.load %arg10[%c0_24, %c0_25] : memref<16x128xbf16, #tpu.memory_space<vmem>>, vector<16x128xbf16>
      tpu.vector_store %arg10[%c0_24, %c0_25], %50 {strides = array<i32>} : memref<16x128xbf16, #tpu.memory_space<vmem>>, vector<16x128xbf16>,
    } else {
    }
    %c0 = arith.constant 0 : index
    %c0_1 = arith.constant 0 : index
    %3 = vector.load %arg10[%c0, %c0_1] : memref<16x128xbf16, #tpu.memory_space<vmem>>, vector<16x128xbf16>
    %c0_2 = arith.constant 0 : index
    %c0_3 = arith.constant 0 : index
    %4 = vector.load %arg7[%c0_2, %c0_3] : memref<128x128xbf16, #tpu.memory_space<vmem>>, vector<128x128xbf16>
    %cst = arith.constant dense<0.000000e+00> : vector<16x128xf32>
    %5 = tpu.matmul %3, %4, %cst {dimension_numbers = #tpu.dot_dimension_numbers<[1], [0], [0], [1], [0, 0, 1, 1], [], []>} : vector<16x128xbf16>, vector<128x128xbf16>, vector<16x128xf32> -> vector<16x128xf32>
    %c0_4 = arith.constant 0 : index
    %c0_5 = arith.constant 0 : index
    %6 = vector.load %arg8[%c0_4, %c0_5] : memref<1x128xbf16, #tpu.memory_space<vmem>>, vector<1x128xbf16>
    %7 = arith.extf %6 : vector<1x128xbf16> to vector<1x128xf32>
    %8 = vector.broadcast %7 : vector<1x128xf32> to vector<16x128xf32>
    %9 = arith.addf %5, %8 : vector<16x128xf32>
    %c0_6 = arith.constant 0 : index
    %c0_7 = arith.constant 0 : index
    %10 = vector.load %arg9[%c0_6, %c0_7] : memref<16x128xf32, #tpu.memory_space<vmem>>, vector<16x128xf32>
    tpu.vector_store %arg9[%c0_6, %c0_7], %9 {strides = array<i32>} : memref<16x128xf32, #tpu.memory_space<vmem>>, vector<16x128xf32>,
    return
  }
  func.func @transform_0(%arg0: i32, %arg1: i32) -> (i32, i32) {
    %c0_i32 = arith.constant 0 : i32
    %c0_i32_0 = arith.constant 0 : i32
    return %arg0, %c0_i32 : i32, i32
  }
  func.func @transform_1(%arg0: i32, %arg1: i32) -> (i32, i32) {
    %c0_i32 = arith.constant 0 : i32
    %c0_i32_0 = arith.constant 0 : i32
    %c0_i32_1 = arith.constant 0 : i32
    return %c0_i32, %c0_i32_0 : i32, i32
  }
  func.func @transform_2(%arg0: i32, %arg1: i32) -> (i32, i32) {
    %c0_i32 = arith.constant 0 : i32
    %c0_i32_0 = arith.constant 0 : i32
    %c0_i32_1 = arith.constant 0 : i32
    return %c0_i32, %c0_i32_0 : i32, i32
  }
  func.func @transform_3(%arg0: i32, %arg1: i32) -> (i32, i32, i32) {
    %c0_i32 = arith.constant 0 : i32
    %c0_i32_0 = arith.constant 0 : i32
    %c0_i32_1 = arith.constant 0 : i32
    %c0_i32_2 = arith.constant 0 : i32
    return %c0_i32, %c0_i32_0, %c0_i32_1 : i32, i32, i32
  }
  func.func @transform_4(%arg0: i32, %arg1: i32) -> (i32, i32, i32) {
    %c0_i32 = arith.constant 0 : i32
    %c0_i32_0 = arith.constant 0 : i32
    %c0_i32_1 = arith.constant 0 : i32
    %c0_i32_2 = arith.constant 0 : i32
    return %c0_i32, %c0_i32_0, %c0_i32_1 : i32, i32, i32
  }
  func.func @transform_5(%arg0: i32, %arg1: i32) -> (i32, i32) {
    %c0_i32 = arith.constant 0 : i32
    %c0_i32_0 = arith.constant 0 : i32
    return %c0_i32, %arg1 : i32, i32
  }
  func.func @transform_6(%arg0: i32, %arg1: i32) -> (i32, i32) {
    %c0_i32 = arith.constant 0 : i32
    %c0_i32_0 = arith.constant 0 : i32
    return %c0_i32, %arg1 : i32, i32
  }
  func.func @transform_7(%arg0: i32, %arg1: i32) -> (i32, i32) {
    %c0_i32 = arith.constant 0 : i32
    return %arg0, %arg1 : i32, i32
  }
}

module attributes {stable_mosaic.version = 11 : i64} {
  func.func @_kgram_mlp_kernel(%arg0: i32, %arg1: i32, %arg2: memref<16x3xi32, #tpu.memory_space<vmem>>, %arg3: memref<128x128xbf16, #tpu.memory_space<vmem>>, %arg4: memref<1x128xbf16, #tpu.memory_space<vmem>>, %arg5: memref<1x128x128xbf16, #tpu.memory_space<vmem>>, %arg6: memref<1x1x128xbf16, #tpu.memory_space<vmem>>, %arg7: memref<128x128xbf16, #tpu.memory_space<vmem>>, %arg8: memref<1x128xbf16, #tpu.memory_space<vmem>>, %arg9: memref<16x128xf32, #tpu.memory_space<vmem>>, %arg10: memref<16x128xbf16, #tpu.memory_space<vmem>>) attributes {dimension_semantics = [#tpu.dimension_semantics<parallel>, #tpu.dimension_semantics<arbitrary>], iteration_bounds = array<i64: 2, 1>, scalar_prefetch = 0 : i64, scratch_operands = 1 : i64, tpu.core_type = #tpu.core_type<tc>, window_params = [{transform_indices = @transform_0, window_bounds = array<i64: 16, 3>}, {pipeline_mode = #tpu.pipeline_mode<synchronous>, transform_indices = @transform_1, window_bounds = array<i64: 128, 128>}, {pipeline_mode = #tpu.pipeline_mode<synchronous>, transform_indices = @transform_2, window_bounds = array<i64: 1, 128>}, {pipeline_mode = #tpu.pipeline_mode<synchronous>, transform_indices = @transform_3, window_bounds = array<i64: 1, 128, 128>}, {pipeline_mode = #tpu.pipeline_mode<synchronous>, transform_indices = @transform_4, window_bounds = array<i64: 1, 1, 128>}, {transform_indices = @transform_5, window_bounds = array<i64: 128, 128>}, {transform_indices = @transform_6, window_bounds = array<i64: 1, 128>}, {transform_indices = @transform_7, window_bounds = array<i64: 16, 128>}]} {
    %c0_i32 = arith.constant 0 : i32
    %0 = arith.cmpi eq, %arg1, %c0_i32 : i32
    %1 = arith.extui %0 : i1 to i32
    %c0_i32_0 = arith.constant 0 : i32
    %2 = arith.cmpi ne, %1, %c0_i32_0 : i32
    scf.if %2 {
      %c0_8 = arith.constant 0 : index
      %c0_9 = arith.constant 0 : index
      %11 = vector.load %arg2[%c0_8, %c0_9] : memref<16x3xi32, #tpu.memory_space<vmem>>, vector<16x3xi32>
      %12 = tpu.iota {dimensions = array<i32: 1>} : vector<16x128xi32>
      %13 = vector.extract_strided_slice %11 {offsets = [0, 0], sizes = [16, 1], strides = [1, 1]} : vector<16x3xi32> to vector<16x1xi32>
      %14 = vector.broadcast %13 : vector<16x1xi32> to vector<16x128xi32>
      %15 = arith.cmpi eq, %12, %14 : vector<16x128xi32>
      %16 = vector.extract_strided_slice %11 {offsets = [0, 1], sizes = [16, 1], strides = [1, 1]} : vector<16x3xi32> to vector<16x1xi32>
      %c16_i32 = arith.constant 16 : i32
      %17 = vector.broadcast %c16_i32 : i32 to vector<16x1xi32>
      %18 = arith.addi %16, %17 : vector<16x1xi32>
      %19 = vector.broadcast %18 : vector<16x1xi32> to vector<16x128xi32>
      %20 = arith.cmpi eq, %12, %19 : vector<16x128xi32>
      %21 = arith.ori %15, %20 : vector<16x128xi1>
      %22 = vector.extract_strided_slice %11 {offsets = [0, 2], sizes = [16, 1], strides = [1, 1]} : vector<16x3xi32> to vector<16x1xi32>
      %c32_i32 = arith.constant 32 : i32
      %23 = vector.broadcast %c32_i32 : i32 to vector<16x1xi32>
      %24 = arith.addi %22, %23 : vector<16x1xi32>
      %25 = vector.broadcast %24 : vector<16x1xi32> to vector<16x128xi32>
      %26 = arith.cmpi eq, %12, %25 : vector<16x128xi32>
      %27 = arith.ori %21, %26 : vector<16x128xi1>
      %28 = arith.extui %27 : vector<16x128xi1> to vector<16x128xi32>
      %29 = arith.sitofp %28 : vector<16x128xi32> to vector<16x128xf32>
      %30 = arith.truncf %29 : vector<16x128xf32> to vector<16x128xbf16>
      %c0_10 = arith.constant 0 : index
      %c0_11 = arith.constant 0 : index
      %31 = vector.load %arg3[%c0_10, %c0_11] : memref<128x128xbf16, #tpu.memory_space<vmem>>, vector<128x128xbf16>
      %cst_12 = arith.constant dense<0.000000e+00> : vector<16x128xf32>
      %32 = tpu.matmul %30, %31, %cst_12 {dimension_numbers = #tpu.dot_dimension_numbers<[1], [0], [0], [1], [0, 0, 1, 1], [], []>} : vector<16x128xbf16>, vector<128x128xbf16>, vector<16x128xf32> -> vector<16x128xf32>
      %c0_13 = arith.constant 0 : index
      %c0_14 = arith.constant 0 : index
      %33 = vector.load %arg4[%c0_13, %c0_14] : memref<1x128xbf16, #tpu.memory_space<vmem>>, vector<1x128xbf16>
      %34 = arith.extf %33 : vector<1x128xbf16> to vector<1x128xf32>
      %35 = vector.broadcast %34 : vector<1x128xf32> to vector<16x128xf32>
      %36 = arith.addf %32, %35 : vector<16x128xf32>
      %cst_15 = arith.constant 0.000000e+00 : f32
      %37 = vector.broadcast %cst_15 : f32 to vector<16x128xf32>
      %38 = arith.maximumf %36, %37 : vector<16x128xf32>
      %39 = arith.truncf %38 : vector<16x128xf32> to vector<16x128xbf16>
      %c0_16 = arith.constant 0 : index
      %c0_17 = arith.constant 0 : index
      %c0_18 = arith.constant 0 : index
      %40 = vector.load %arg5[%c0_16, %c0_17, %c0_18] : memref<1x128x128xbf16, #tpu.memory_space<vmem>>, vector<1x128x128xbf16>
      %41 = vector.shape_cast %40 : vector<1x128x128xbf16> to vector<128x128xbf16>
      %cst_19 = arith.constant dense<0.000000e+00> : vector<16x128xf32>
      %42 = tpu.matmul %39, %41, %cst_19 {dimension_numbers = #tpu.dot_dimension_numbers<[1], [0], [0], [1], [0, 0, 1, 1], [], []>} : vector<16x128xbf16>, vector<128x128xbf16>, vector<16x128xf32> -> vector<16x128xf32>
      %c0_20 = arith.constant 0 : index
      %c0_21 = arith.constant 0 : index
      %c0_22 = arith.constant 0 : index
      %43 = vector.load %arg6[%c0_20, %c0_21, %c0_22] : memref<1x1x128xbf16, #tpu.memory_space<vmem>>, vector<1x1x128xbf16>
      %44 = vector.shape_cast %43 : vector<1x1x128xbf16> to vector<1x128xbf16>
      %45 = arith.extf %44 : vector<1x128xbf16> to vector<1x128xf32>
      %46 = vector.broadcast %45 : vector<1x128xf32> to vector<16x128xf32>
      %47 = arith.addf %42, %46 : vector<16x128xf32>
      %cst_23 = arith.constant 0.000000e+00 : f32
      %48 = vector.broadcast %cst_23 : f32 to vector<16x128xf32>
      %49 = arith.maximumf %47, %48 : vector<16x128xf32>
      %50 = arith.truncf %49 : vector<16x128xf32> to vector<16x128xbf16>
      %c0_24 = arith.constant 0 : index
      %c0_25 = arith.constant 0 : index
      %51 = vector.load %arg10[%c0_24, %c0_25] : memref<16x128xbf16, #tpu.memory_space<vmem>>, vector<16x128xbf16>
      tpu.vector_store %arg10[%c0_24, %c0_25], %50 {strides = array<i32>} : memref<16x128xbf16, #tpu.memory_space<vmem>>, vector<16x128xbf16>,
    } else {
    }
    %c0 = arith.constant 0 : index
    %c0_1 = arith.constant 0 : index
    %3 = vector.load %arg10[%c0, %c0_1] : memref<16x128xbf16, #tpu.memory_space<vmem>>, vector<16x128xbf16>
    %c0_2 = arith.constant 0 : index
    %c0_3 = arith.constant 0 : index
    %4 = vector.load %arg7[%c0_2, %c0_3] : memref<128x128xbf16, #tpu.memory_space<vmem>>, vector<128x128xbf16>
    %cst = arith.constant dense<0.000000e+00> : vector<16x128xf32>
    %5 = tpu.matmul %3, %4, %cst {dimension_numbers = #tpu.dot_dimension_numbers<[1], [0], [0], [1], [0, 0, 1, 1], [], []>} : vector<16x128xbf16>, vector<128x128xbf16>, vector<16x128xf32> -> vector<16x128xf32>
    %c0_4 = arith.constant 0 : index
    %c0_5 = arith.constant 0 : index
    %6 = vector.load %arg8[%c0_4, %c0_5] : memref<1x128xbf16, #tpu.memory_space<vmem>>, vector<1x128xbf16>
    %7 = arith.extf %6 : vector<1x128xbf16> to vector<1x128xf32>
    %8 = vector.broadcast %7 : vector<1x128xf32> to vector<16x128xf32>
    %9 = arith.addf %5, %8 : vector<16x128xf32>
    %c0_6 = arith.constant 0 : index
    %c0_7 = arith.constant 0 : index
    %10 = vector.load %arg9[%c0_6, %c0_7] : memref<16x128xf32, #tpu.memory_space<vmem>>, vector<16x128xf32>
    tpu.vector_store %arg9[%c0_6, %c0_7], %9 {strides = array<i32>} : memref<16x128xf32, #tpu.memory_space<vmem>>, vector<16x128xf32>,
    return
  }
  func.func @transform_0(%arg0: i32, %arg1: i32) -> (i32, i32) {
    %c0_i32 = arith.constant 0 : i32
    %c0_i32_0 = arith.constant 0 : i32
    return %arg0, %c0_i32 : i32, i32
  }
  func.func @transform_1(%arg0: i32, %arg1: i32) -> (i32, i32) {
    %c0_i32 = arith.constant 0 : i32
    %c0_i32_0 = arith.constant 0 : i32
    %c0_i32_1 = arith.constant 0 : i32
    return %c0_i32, %c0_i32_0 : i32, i32
  }
  func.func @transform_2(%arg0: i32, %arg1: i32) -> (i32, i32) {
    %c0_i32 = arith.constant 0 : i32
    %c0_i32_0 = arith.constant 0 : i32
    %c0_i32_1 = arith.constant 0 : i32
    return %c0_i32, %c0_i32_0 : i32, i32
  }
  func.func @transform_3(%arg0: i32, %arg1: i32) -> (i32, i32, i32) {
    %c0_i32 = arith.constant 0 : i32
    %c0_i32_0 = arith.constant 0 : i32
    %c0_i32_1 = arith.constant 0 : i32
    %c0_i32_2 = arith.constant 0 : i32
    return %c0_i32, %c0_i32_0, %c0_i32_1 : i32, i32, i32
  }
  func.func @transform_4(%arg0: i32, %arg1: i32) -> (i32, i32, i32) {
    %c0_i32 = arith.constant 0 : i32
    %c0_i32_0 = arith.constant 0 : i32
    %c0_i32_1 = arith.constant 0 : i32
    %c0_i32_2 = arith.constant 0 : i32
    return %c0_i32, %c0_i32_0, %c0_i32_1 : i32, i32, i32
  }
  func.func @transform_5(%arg0: i32, %arg1: i32) -> (i32, i32) {
    %c0_i32 = arith.constant 0 : i32
    %c0_i32_0 = arith.constant 0 : i32
    return %c0_i32, %arg1 : i32, i32
  }
  func.func @transform_6(%arg0: i32, %arg1: i32) -> (i32, i32) {
    %c0_i32 = arith.constant 0 : i32
    %c0_i32_0 = arith.constant 0 : i32
    return %c0_i32, %arg1 : i32, i32
  }
  func.func @transform_7(%arg0: i32, %arg1: i32) -> (i32, i32) {
    %c0_i32 = arith.constant 0 : i32
    return %arg0, %arg1 : i32, i32
  }
}

</mosaic_0001>

<bundles_post_ra>
// kernel: tpu_custom_call.1
= control target key start
LH: loop header
LB: loop body
LE: loop exit
PB: predicated region body
PF: predicated region fallthrough
CT: control target
= control target key end

     0   :  { %s1434_s0 = inlined_call_operand.vmem [shape: s32[32,3], index: 0, kind: input, shape index: {}]   ;;  %s1435_s1 = inlined_call_operand.hbm [shape: bf16[128,128], index: 1, kind: input, shape index: {}]   ;;  %s1436_s2 = inlined_call_operand.vmem [shape: bf16[1,128], index: 2, kind: input, shape index: {}]   ;;  %s1437_s3 = inlined_call_operand.hbm [shape: bf16[1,128,128], index: 3, kind: input, shape index: {}]   ;;  %s1438_s4 = inlined_call_operand.vmem [shape: bf16[1,1,128], index: 4, kind: input, shape index: {}]   ;;  %s1439_s5 = inlined_call_operand.hbm [shape: bf16[128,128], index: 5, kind: input, shape index: {}]   ;;  %s1440_s6 = inlined_call_operand.vmem [shape: bf16[1,128], index: 6, kind: input, shape index: {}]   ;;  %s1441_s7 = inlined_call_operand.hbm [shape: f32[32,128], index: 7, kind: output, shape index: {}]  }
   0x1   :  { %1444 = sst [smem:[#allocation16_spill]] %s1437_s3 }
   0x2   :  { %12 = vsyncpa [#allocation4], 0 }
   0x3   :  { %13 = vsyncpa [#allocation7], 0 }
   0x4   :  { %14 = vsyncpa [#allocation5], 0 }
   0x5   :  { %16 = vsyncpa [#allocation5 + $0x1], 0  ;;  %s1288_s24 = smov 0   ;;  %s1290_s25 = smov 0  }
   0x6   :  { %s1292_s26 = smov 0   ;;  %s1294_s27 = smov 0  }
   0x7   :  { %s1296_s28 = smov 0   ;;  %s1298_s29 = smov 0  }
   0x8 LB: > { %1445 = sst [smem:[#allocation13_spill]] %s1231_s28  ;;  %s806_s30 = sadd.s32 4294967295, %s1235_s29   ;;  %s1235_s29 = sphi %s1298_s29, %s22_s29   ;;  %s1231_s28 = sphi %s1296_s28, %s1456_s28   ;;  %s1227_s27 = sphi %s1294_s27, %s1455_s27   ;;  %s1223_s26 = sphi %s1292_s26, %s1459_s26   ;;  %s1219_s25 = sphi %s1290_s25, %s1458_s25   ;;  %s1215_s24 = sphi %s1288_s24, %s1457_s24  }
   0x9   : > { %s807_s8 = sadd.s32 4294967294, %s1235_s29   ;;  %s34_s9 = sadd.s32 1, %s1231_s28 }
   0xa   : > { %s205_s10 = sadd.s32 1, %s1223_s26  ;;  %p36_p0 = scmp.ge.s32.totalorder %s34_s9, 2 }
   0xb   : > { %p215_p1 = scmp.ne.s32.totalorder %s1223_s26, %s1219_s25  ;;  %p216_p2 = scmp.eq.s32.totalorder %s806_s30, 1 }
   0xc   : > { %p221_p3 = scmp.ne.s32.totalorder %s1219_s25, %s1215_s24  ;;  %s1461_s9 = smov (%p36_p0, %s34_s9), 0 }
   0xd   : > { %1446 = sst [smem:[#allocation14_spill]] %s1461_s9  ;;  %p1328_p4 = por %p216_p2, %p215_p1 }
   0xe   : > { %p222_p5 = scmp.eq.s32.totalorder %s807_s8, 1  ;;  %s200_s12 = ssub.s32 %s1231_s28, %s1461_s9 }
   0xf   : > { %p808_p6 = scmp.ge.s32.totalorder %s1235_s29, 1  ;;  %p203_p7 = scmp.eq.s32.totalorder %s200_s12, 0 }
  0x10   : > { %p1335_p8 = por %p222_p5, %p221_p3  ;;  %p229_p9 = scmp.lt.s32.totalorder %s1235_s29, 3 }
  0x11   : > { %s1341_s14 = scalar_select %p203_p7, %s1223_s26, %s205_s10  }
  0x12   : > { %p1343_p10 = pnand %p808_p6, %p229_p9  ;;  %p1347_p11 = scmp.eq.s32.totalorder %s806_s30, 0 }
  0x13   : > { %1449 = sst [smem:[#allocation15_spill]] %s1341_s14  ;;  %s1237_s21 = smov [#allocation6]  }
  0x14   : > { %p975_p12 = pneg %p1343_p10  ;;  %s1452_s3 = sld [smem:[#allocation16_spill]] }
  0x15   : > { %s259_s22 = sshll.u32 %s1237_s21, 4  ;;  %s1238_s23 = smov 64   ;;  %s260_s22 = int_to_ptr.vmem [resolvable:$true] %s259_s22 }
  0x16   : > { %p1358_p13 = pnand %p1347_p11, %p975_p12  ;;  %s1239_s30 = smov 4  }
  0x17   : > { %s240_s12 = sshll.u32 %s1435_s1, 4  ;;  %s1240_s17 = smov [#allocation3]   ;;  %s241_s12 = int_to_ptr.hbm [resolvable:$true] %s240_s12 }
  0x18   : > { %s242_s18 = sshll.u32 %s1240_s17, 4  ;;  %s276_s28 = sshll.u32 %s1439_s5, 4  ;;  %s243_s18 = int_to_ptr.vmem [resolvable:$true] %s242_s18  ;;  %s277_s28 = int_to_ptr.hbm [resolvable:$true] %s276_s28 }
  0x19   : > { %978 = dma.hbm_to_vmem [thread:$0]  (!%p1358_p13), %s241_s12, 1024, %s243_s18, [#allocation4], %s1238_s23, %s1238_s23, %s1239_s30  }
  0x1a   : > { %s257_s19 = sshll.u32 %s1452_s3, 4  ;;  %s1241_s21 = smov [#allocation8]   ;;  %s258_s19 = int_to_ptr.hbm [resolvable:$true] %s257_s19 }
  0x1b   : > { %981 = dma.hbm_to_vmem [thread:$0]  (!%p1358_p13), %s258_s19, 1024, %s260_s22, [#allocation7], %s1238_s23, %s1238_s23, %s1239_s30  }
  0x1c   : > { %s278_s14 = sshll.u32 %s1241_s21, 4  ;;  %309 = sbr.rel (%p1343_p10) target bundleno = 606 (0x25e), region = 48  ;;  %s279_s14 = int_to_ptr.vmem [resolvable:$true] %s278_s14 }
  0x1d   : > { %984 = dma.hbm_to_vmem [thread:$0]  (!%p1358_p13), %s277_s28, 1024, %s279_s14, [#allocation7], %s1238_s23, %s1238_s23, %s1239_s30  }
  0x21   : > { %1202 = dma.done.wait (%p1347_p11), [#allocation4], 1024  }
  0x22   : > { %1204 = vsyncadd (%p1347_p11), [#allocation4], 4294966272 }
  0x23   : > { %1206 = dma.done.wait (%p1347_p11), [#allocation7], 2048  }
  0x24   : > { %1208 = vsyncadd (%p1347_p11), [#allocation7], 4294965248  ;;  %s819_s3 = sshll.u32 %s1227_s27, 1  ;;  %v1242_v0 = vmov 0   ;;  %v1243_v1 = vmov 1   ;;  %v1244_v2 = vmov 2   ;;  %v371_v21 = vlaneseq }
  0x25   : > { %1055 = vset.pattern.permute.xlu0 %v1242_v0  ;;  %p356_p0 = scmp.lt.s32.totalorder %s819_s3, 3  ;;  %1056 = vset.pattern.permute.xlu1 %v1243_v1  ;;  %v937_v4 = vld [vmem:[#allocation3 + $0x38] sm:$0xff]  ;;  %v936_v7 = vld [vmem:[#allocation3 + $0x30] sm:$0xff]  ;;  %v935_v9 = vld [vmem:[#allocation3 + $0x28] sm:$0xff]  ;;  %v1245_v29 = vmov 1.0|1.0  }
  0x26   : > { %1057 = vset.pattern.permute.xlu2 %v1244_v2  ;;  %477 = vmatpush.bf16.msra.mxu0 %v937_v4  ;;  %v934_v12 = vld [vmem:[#allocation3 + $0x20] sm:$0xff]  ;;  %v933_v13 = vld [vmem:[#allocation3 + $0x18] sm:$0xff]  ;;  %v932_v14 = vld [vmem:[#allocation3 + $0x10] sm:$0xff]  ;;  %v372_v24 = vand.u32 127, %v371_v21  ;;  %s352_s8 = sand.u32 1, %s1219_s25   ;;  %s955_s12 = sshll.u32 %s1227_s27, 4 }
  0x27   : > { %s1463_s3 = smov (!%p356_p0, %s819_s3), 3  ;;  %v931_v15 = vld [vmem:[#allocation3 + $0x8] sm:$0xff]  ;;  %v930_v16 = vld [vmem:[#allocation3] sm:$0xff]  ;;  %v945_v17 = vld [vmem:[#allocation6 + $0x38] sm:$0xff]  ;;  %s818_s10 = sshll.u32 %s352_s8, 4 }
  0x28   : > { %s820_s28 = sshll.u32 %s1463_s3, 3  ;;  %561 = vmatpush.bf16.msra.mxu1 %v945_v17  ;;  %v944_v18 = vld [vmem:[#allocation6 + $0x30] sm:$0xff]  ;;  %v943_v19 = vld [vmem:[#allocation6 + $0x28] sm:$0xff]  ;;  %v942_v20 = vld [vmem:[#allocation6 + $0x20] sm:$0xff]  ;;  %s685_s21 = scalar_lea.hbm %s1441_s7, %s955_s12 }
  0x29   : > { %s359_s15 = scalar_lea.vmem %s1434_s0, %s820_s28  ;;  %v941_v30 = vld [vmem:[#allocation6 + $0x18] sm:$0xff]  ;;  %v940_v31 = vld [vmem:[#allocation6 + $0x10] sm:$0xff]  ;;  %v939_v32 = vld [vmem:[#allocation6 + $0x8] sm:$0xff]  ;;  %s354_s3 = scalar_lea.vmem [#allocation9], %s818_s10 }
  0x2a   : > { %v369_v3 = vld [vmem:[%s359_s15] sm:$0xff]  ;;  %v370_v8 = vld [vmem:[%s359_s15 + $0x8] sm:$0xff]  ;;  %478 = vmatpush.bf16.msra.mxu0 %v936_v7  ;;  %v953_v35 = vld [vmem:[#allocation8 + $0x30] sm:$0xff]  ;;  %s686_s28 = sshll.u32 %s354_s3, 4  ;;  %s688_s9 = sshll.u32 %s685_s21, 4  ;;  %s687_s28 = int_to_ptr.vmem [resolvable:$true] %s686_s28  ;;  %s689_s9 = int_to_ptr.hbm [resolvable:$true] %s688_s9 }
  0x2b   : > { %374 = vperm.xlu0 %1055, %v369_v3   ;;  %v381_v5 = vadd.s32 16, %v369_v3  ;;  %v393_v6 = vadd.s32 32, %v369_v3  ;;  %v382_v10 = vadd.s32 16, %v370_v8  ;;  %v394_v11 = vadd.s32 32, %v370_v8  ;;  %v938_v33 = vld [vmem:[#allocation6] sm:$0xff]  ;;  %v954_v34 = vld [vmem:[#allocation8 + $0x38] sm:$0xff] }
  0x2c   : > { %562 = vmatpush.bf16.msra.mxu1 %v944_v18  ;;  %656 = vmatpush.bf16.msra.mxu2 %v954_v34  ;;  %v426_v36 = vld [vmem:[%s1436_s2] sm:$0x1]  ;;  %v952_v46 = vld [vmem:[#allocation8 + $0x28] sm:$0xff]  ;;  %v951_v47 = vld [vmem:[#allocation8 + $0x20] sm:$0xff]  ;;  %s673_s14 = scalar_lea.sflag [#allocation5], %s352_s8  ;;  %s1163_s15 = sshra.s32 %s689_s9, 4  ;;  %s1164_s15 = int_to_ptr.hbm [resolvable:$true] %s1163_s15 }
  0x2d   : > { %384 = vperm.xlu1 %1056, %v381_v5   ;;  %396 = vperm.xlu2 %1057, %v393_v6   ;;  %v427_v37 = vunpack.c.l.bf16 %v426_v36  ;;  %v950_v48 = vld [vmem:[#allocation8 + $0x18] sm:$0xff]  ;;  %v949_v49 = vld [vmem:[#allocation8 + $0x10] sm:$0xff]  ;;  %v948_v50 = vld [vmem:[#allocation8 + $0x8] sm:$0xff]  ;;  %s1165_s27 = scalar_lea.hbm %s1164_s15, 16  ;;  %s1169_s20 = scalar_lea.hbm %s1441_s7, 32 }
  0x2e   : > { %479 = vmatpush.bf16.msra.mxu0 %v935_v9  ;;  %v947_v51 = vld [vmem:[#allocation8] sm:$0xff]  ;;  %v510_v52 = vld [vmem:[%s1438_s4] sm:$0x1]  ;;  %p1166_p1 = scmp.ne.s32.totalorder %s1164_s15, %s1165_s27  ;;  %p1170_p5 = scmp.lt.s32.totalorder %s1164_s15, %s1441_s7 }
  0x2f   : > { %v428_v39 = vperm.slane %v427_v37, 0  ;;  %v511_v53 = vunpack.c.l.bf16 %v510_v52  ;;  %v599_v63 = vld [vmem:[%s1440_s6] sm:$0x1]  ;;  %p1171_p6 = scmp.lt.s32.totalorder %s1169_s20, %s1165_s27 }
  0x30   : > { %563 = vmatpush.bf16.msra.mxu1 %v943_v19  ;;  %657 = vmatpush.bf16.msra.mxu2 %v953_v35  ;;  %v600_v0 = vunpack.c.l.bf16 %v599_v63  ;;  %p1167_p2 = pnand %p1166_p1, %p1328_p4 }
  0x31   : > { %v512_v55 = vperm.slane %v511_v53, 0  ;;  %p1172_p7 = por %p1171_p6, %p1170_p5 }
  0x32   : > { %480 = vmatpush.bf16.msra.mxu0 %v934_v12  ;;  %v601_v1 = vperm.slane %v600_v0, 0  ;;  %p1168_p3 = pneg %p1167_p2 }
  0x33   : > { %377 = vperm.xlu0 %1055, %v370_v8  }
  0x34   : > { %564 = vmatpush.bf16.msra.mxu1 %v942_v20  ;;  %658 = vmatpush.bf16.msra.mxu2 %v952_v46  ;;  %p1173_p9 = pnand %p1172_p7, %p1168_p3 }
  0x35   : > { %387 = vperm.xlu1 %1056, %v382_v10   ;;  %399 = vperm.xlu2 %1057, %v394_v11  }
  0x36   : > { %481 = vmatpush.bf16.msra.mxu0 %v933_v13 }
  0x38   : > { %565 = vmatpush.bf16.msra.mxu1 %v941_v30  ;;  %659 = vmatpush.bf16.msra.mxu2 %v951_v47 }
  0x3a   : > { %482 = vmatpush.bf16.msra.mxu0 %v932_v14 }
  0x3b   : > { %1058 = vset.pattern.permute.xlu0 %v1244_v2 }
  0x3c   : > { %566 = vmatpush.bf16.msra.mxu1 %v940_v31  ;;  %660 = vmatpush.bf16.msra.mxu2 %v950_v48 }
  0x3e   : > { %483 = vmatpush.bf16.msra.mxu0 %v931_v15 }
  0x40   : > { %567 = vmatpush.bf16.msra.mxu1 %v939_v32  ;;  %661 = vmatpush.bf16.msra.mxu2 %v949_v49 }
  0x42   : > { %484 = vmatpush.bf16.msra.mxu0 %v930_v16 }
  0x44   : > { %568 = vmatpush.bf16.msra.mxu1 %v938_v33  ;;  %662 = vmatpush.bf16.msra.mxu2 %v948_v50 }
  0x48   : > { %663 = vmatpush.bf16.msra.mxu2 %v947_v51 }
  0x87   : > { %v397_v22 = vpop.permute.xlu2 %396 }
  0x88   : > { %vm401_vm2 = vcmp.eq.s32.totalorder %v372_v24, %v397_v22 }
  0x8f   : > { %v400_v27 = vpop.permute.xlu2 %399 }
  0x90   : > { %vm402_vm7 = vcmp.eq.s32.totalorder %v372_v24, %v400_v27 }
  0x9d   : > { %v375_v23 = vpop.permute.xlu0 %374 }
  0x9e   : > { %vm379_vm0 = vcmp.eq.s32.totalorder %v372_v24, %v375_v23 }
  0x9f   : > { %v385_v25 = vpop.permute.xlu1 %384 }
  0xa0   : > { %vm389_vm1 = vcmp.eq.s32.totalorder %v372_v24, %v385_v25 }
  0xa1   : > { %vm391_vm3 = vmor %vm379_vm0, %vm389_vm1 }
  0xa2   : > { %vm403_vm4 = vmor %vm391_vm3, %vm401_vm2 }
  0xa5   : > { %v378_v26 = vpop.permute.xlu0 %377 }
  0xa6   : > { %vm380_vm5 = vcmp.eq.s32.totalorder %v372_v24, %v378_v26 }
  0xa7   : > { %v388_v28 = vpop.permute.xlu1 %387 }
  0xa8   : > { %vm390_vm6 = vcmp.eq.s32.totalorder %v372_v24, %v388_v28 }
  0xa9   : > { %vm392_vm8 = vmor %vm380_vm5, %vm390_vm6 }
  0xaa   : > { %vm404_vm9 = vmor %vm392_vm8, %vm402_vm7 }
  0xab   : > { %vm855_vm10 = vmpackc.low %vm404_vm9, %vm403_vm4 }
  0xac   : > { %856 = vmatmul.msk.bf16.vlgmr.msra.gmra.mxu0 %vm855_vm10, %v1245_v29 }
 0x129   : > { %v486_v38 = vpop.f32.mrf.mxu0 }
 0x12a   : > { %v487_v40 = vadd.f32 %v486_v38, %v428_v39 }
 0x12c   : > { %v491_v43 = vmax.f32 %v487_v40, 0.0 }
 0x131   : > { %v488_v41 = vpop.f32.mrf.mxu0 }
 0x132   : > { %v489_v42 = vadd.f32 %v488_v41, %v428_v39 }
 0x134   : > { %v492_v44 = vmax.f32 %v489_v42, 0.0 }
 0x136   : > { %v493_v45 = vpack.c.bf16 %v492_v44, %v491_v43 }
 0x138   : > { %569 = vmatmul.bf16.vlgmr.msra.gmra.mxu1 %v493_v45 }
 0x1b5   : > { %v570_v54 = vpop.f32.mrf.mxu1 }
 0x1b6   : > { %v571_v56 = vadd.f32 %v570_v54, %v512_v55 }
 0x1b8   : > { %v575_v59 = vmax.f32 %v571_v56, 0.0 }
 0x1bd   : > { %v572_v57 = vpop.f32.mrf.mxu1 }
 0x1be   : > { %v573_v58 = vadd.f32 %v572_v57, %v512_v55 }
 0x1c0   : > { %v576_v60 = vmax.f32 %v573_v58, 0.0 }
 0x1c2   : > { %v959_v61 = vpack.c.bf16 %v576_v60, %v575_v59 }
 0x1c4   : > { %960 = vst [vmem:[#allocation2] sm:$0xff] %v959_v61  }
 0x1cb   : > { %v946_v62 = vld [vmem:[#allocation2] sm:$0xff] }
 0x1cc   : > { %664 = vmatmul.bf16.vlgmr.msra.gmra.mxu2 %v946_v62 }
 0x24f   : > { %v665_v2 = vpop.f32.mrf.mxu2 }
 0x250   : > { %v666_v3 = vadd.f32 %v665_v2, %v601_v1 }
 0x252   : > { %670 = vst [vmem:[%s354_s3] sm:$0xff] %v666_v3 }
 0x257   : > { %v667_v4 = vpop.f32.mrf.mxu2 }
 0x258   : > { %v668_v5 = vadd.f32 %v667_v4, %v601_v1 }
 0x25a   : > { %671 = vst [vmem:[%s354_s3 + $0x8] sm:$0xff] %v668_v5 }
 0x25b   : > { %1176 = shalt.err (!%p1173_p9)
}
 0x25c   : > { %s1246_s30 = smov 128   ;;  %s1247_s8 = smov 8  }
 0x25d   : > { %973 = dma.vmem_to_hbm [thread:$0]  (%p1328_p4), %s687_s28, 256, %s689_s9, %s673_s14, %s1246_s30, %s1246_s30, %s1247_s8  }
 0x25e PF: > { %p995_p10 = scmp.ge.s32.totalorder %s1235_s29, 2  ;;  %s703_s10 = sand.u32 1, %s1215_s24  }
 0x25f   : > { %s704_s12 = scalar_lea.sflag [#allocation5], %s703_s10 }
 0x260   : > { %p986_p11 = pnand %p995_p10, %p1335_p8 }
 0x262   : > { %p987_p12 = pneg %p986_p11 }
 0x264   : > { %1210 = dma.done.wait (%p987_p12), %s704_s12, 256  }
 0x265   : > { %1212 = vsyncadd (%p987_p12), %s704_s12, 4294967040  ;;  %s22_s29 = sadd.s32 1, %s1235_s29   ;;  %s1454_s17 = sld [smem:[#allocation15_spill]] }
 0x266   : > { %p19_p13 = scmp.ge.s32.totalorder %s22_s29, 4   ;;  %s1455_s27 = sld [smem:[#allocation13_spill]] }
 0x267   : > { %s1456_s28 = sld [smem:[#allocation14_spill]]  ;;  %s1457_s24 = smov %s1219_s25 }
 0x268   : > { %s1458_s25 = smov %s1223_s26  ;;  %21 = sbr.rel (!%p19_p13) target bundleno = 8 (0x8), region = 104 }
 0x26b   : > { %s1459_s26 = smov %s1454_s17 }
 0x26d   :  { %710 = vsyncpa [#allocation4], 1 }
 0x26e   :  { %712 = vsyncpa [#allocation4 + $0x1], 1 }
 0x26f   :  { %713 = vsyncpa [#allocation7], 1 }
 0x270   :  { %714 = vsyncpa [#allocation5], 1 }
 0x271   :  { %716 = vsyncpa [#allocation5 + $0x1], 1 }

// kernel: tpu_custom_call.1
= control target key start
LH: loop header
LB: loop body
LE: loop exit
PB: predicated region body
PF: predicated region fallthrough
CT: control target
= control target key end

     0   :  { %s1434_s0 = inlined_call_operand.vmem [shape: s32[32,3], index: 0, kind: input, shape index: {}]   ;;  %s1435_s1 = inlined_call_operand.hbm [shape: bf16[128,128], index: 1, kind: input, shape index: {}]   ;;  %s1436_s2 = inlined_call_operand.vmem [shape: bf16[1,128], index: 2, kind: input, shape index: {}]   ;;  %s1437_s3 = inlined_call_operand.hbm [shape: bf16[1,128,128], index: 3, kind: input, shape index: {}]   ;;  %s1438_s4 = inlined_call_operand.vmem [shape: bf16[1,1,128], index: 4, kind: input, shape index: {}]   ;;  %s1439_s5 = inlined_call_operand.hbm [shape: bf16[128,128], index: 5, kind: input, shape index: {}]   ;;  %s1440_s6 = inlined_call_operand.vmem [shape: bf16[1,128], index: 6, kind: input, shape index: {}]   ;;  %s1441_s7 = inlined_call_operand.hbm [shape: f32[32,128], index: 7, kind: output, shape index: {}]  }
   0x1   :  { %1444 = sst [smem:[#allocation16_spill]] %s1437_s3 }
   0x2   :  { %12 = vsyncpa [#allocation4], 0 }
   0x3   :  { %13 = vsyncpa [#allocation7], 0 }
   0x4   :  { %14 = vsyncpa [#allocation5], 0 }
   0x5   :  { %16 = vsyncpa [#allocation5 + $0x1], 0  ;;  %s1288_s24 = smov 0   ;;  %s1290_s25 = smov 0  }
   0x6   :  { %s1292_s26 = smov 0   ;;  %s1294_s27 = smov 0  }
   0x7   :  { %s1296_s28 = smov 0   ;;  %s1298_s29 = smov 0  }
   0x8 LB: > { %1445 = sst [smem:[#allocation13_spill]] %s1231_s28  ;;  %s806_s30 = sadd.s32 4294967295, %s1235_s29   ;;  %s1235_s29 = sphi %s1298_s29, %s22_s29   ;;  %s1231_s28 = sphi %s1296_s28, %s1456_s28   ;;  %s1227_s27 = sphi %s1294_s27, %s1455_s27   ;;  %s1223_s26 = sphi %s1292_s26, %s1459_s26   ;;  %s1219_s25 = sphi %s1290_s25, %s1458_s25   ;;  %s1215_s24 = sphi %s1288_s24, %s1457_s24  }
   0x9   : > { %s807_s8 = sadd.s32 4294967294, %s1235_s29   ;;  %s34_s9 = sadd.s32 1, %s1231_s28 }
   0xa   : > { %s205_s10 = sadd.s32 1, %s1223_s26  ;;  %p36_p0 = scmp.ge.s32.totalorder %s34_s9, 2 }
   0xb   : > { %p215_p1 = scmp.ne.s32.totalorder %s1223_s26, %s1219_s25  ;;  %p216_p2 = scmp.eq.s32.totalorder %s806_s30, 1 }
   0xc   : > { %p221_p3 = scmp.ne.s32.totalorder %s1219_s25, %s1215_s24  ;;  %s1461_s9 = smov (%p36_p0, %s34_s9), 0 }
   0xd   : > { %1446 = sst [smem:[#allocation14_spill]] %s1461_s9  ;;  %p1328_p4 = por %p216_p2, %p215_p1 }
   0xe   : > { %p222_p5 = scmp.eq.s32.totalorder %s807_s8, 1  ;;  %s200_s12 = ssub.s32 %s1231_s28, %s1461_s9 }
   0xf   : > { %p808_p6 = scmp.ge.s32.totalorder %s1235_s29, 1  ;;  %p203_p7 = scmp.eq.s32.totalorder %s200_s12, 0 }
  0x10   : > { %p1335_p8 = por %p222_p5, %p221_p3  ;;  %p229_p9 = scmp.lt.s32.totalorder %s1235_s29, 3 }
  0x11   : > { %s1341_s14 = scalar_select %p203_p7, %s1223_s26, %s205_s10  }
  0x12   : > { %p1343_p10 = pnand %p808_p6, %p229_p9  ;;  %p1347_p11 = scmp.eq.s32.totalorder %s806_s30, 0 }
  0x13   : > { %1449 = sst [smem:[#allocation15_spill]] %s1341_s14  ;;  %s1237_s21 = smov [#allocation6]  }
  0x14   : > { %p975_p12 = pneg %p1343_p10  ;;  %s1452_s3 = sld [smem:[#allocation16_spill]] }
  0x15   : > { %s259_s22 = sshll.u32 %s1237_s21, 4  ;;  %s1238_s23 = smov 64   ;;  %s260_s22 = int_to_ptr.vmem [resolvable:$true] %s259_s22 }
  0x16   : > { %p1358_p13 = pnand %p1347_p11, %p975_p12  ;;  %s1239_s30 = smov 4  }
  0x17   : > { %s240_s12 = sshll.u32 %s1435_s1, 4  ;;  %s1240_s17 = smov [#allocation3]   ;;  %s241_s12 = int_to_ptr.hbm [resolvable:$true] %s240_s12 }
  0x18   : > { %s242_s18 = sshll.u32 %s1240_s17, 4  ;;  %s276_s28 = sshll.u32 %s1439_s5, 4  ;;  %s243_s18 = int_to_ptr.vmem [resolvable:$true] %s242_s18  ;;  %s277_s28 = int_to_ptr.hbm [resolvable:$true] %s276_s28 }
  0x19   : > { %978 = dma.hbm_to_vmem [thread:$0]  (!%p1358_p13), %s241_s12, 1024, %s243_s18, [#allocation4], %s1238_s23, %s1238_s23, %s1239_s30  }
  0x1a   : > { %s257_s19 = sshll.u32 %s1452_s3, 4  ;;  %s1241_s21 = smov [#allocation8]   ;;  %s258_s19 = int_to_ptr.hbm [resolvable:$true] %s257_s19 }
  0x1b   : > { %981 = dma.hbm_to_vmem [thread:$0]  (!%p1358_p13), %s258_s19, 1024, %s260_s22, [#allocation7], %s1238_s23, %s1238_s23, %s1239_s30  }
  0x1c   : > { %s278_s14 = sshll.u32 %s1241_s21, 4  ;;  %309 = sbr.rel (%p1343_p10) target bundleno = 606 (0x25e), region = 48  ;;  %s279_s14 = int_to_ptr.vmem [resolvable:$true] %s278_s14 }
  0x1d   : > { %984 = dma.hbm_to_vmem [thread:$0]  (!%p1358_p13), %s277_s28, 1024, %s279_s14, [#allocation7], %s1238_s23, %s1238_s23, %s1239_s30  }
  0x21   : > { %1202 = dma.done.wait (%p1347_p11), [#allocation4], 1024  }
  0x22   : > { %1204 = vsyncadd (%p1347_p11), [#allocation4], 4294966272 }
  0x23   : > { %1206 = dma.done.wait (%p1347_p11), [#allocation7], 2048  }
  0x24   : > { %1208 = vsyncadd (%p1347_p11), [#allocation7], 4294965248  ;;  %s819_s3 = sshll.u32 %s1227_s27, 1  ;;  %v1242_v0 = vmov 0   ;;  %v1243_v1 = vmov 1   ;;  %v1244_v2 = vmov 2   ;;  %v371_v21 = vlaneseq }
  0x25   : > { %1055 = vset.pattern.permute.xlu0 %v1242_v0  ;;  %p356_p0 = scmp.lt.s32.totalorder %s819_s3, 3  ;;  %1056 = vset.pattern.permute.xlu1 %v1243_v1  ;;  %v937_v4 = vld [vmem:[#allocation3 + $0x38] sm:$0xff]  ;;  %v936_v7 = vld [vmem:[#allocation3 + $0x30] sm:$0xff]  ;;  %v935_v9 = vld [vmem:[#allocation3 + $0x28] sm:$0xff]  ;;  %v1245_v29 = vmov 1.0|1.0  }
  0x26   : > { %1057 = vset.pattern.permute.xlu2 %v1244_v2  ;;  %477 = vmatpush.bf16.msra.mxu0 %v937_v4  ;;  %v934_v12 = vld [vmem:[#allocation3 + $0x20] sm:$0xff]  ;;  %v933_v13 = vld [vmem:[#allocation3 + $0x18] sm:$0xff]  ;;  %v932_v14 = vld [vmem:[#allocation3 + $0x10] sm:$0xff]  ;;  %v372_v24 = vand.u32 127, %v371_v21  ;;  %s352_s8 = sand.u32 1, %s1219_s25   ;;  %s955_s12 = sshll.u32 %s1227_s27, 4 }
  0x27   : > { %s1463_s3 = smov (!%p356_p0, %s819_s3), 3  ;;  %v931_v15 = vld [vmem:[#allocation3 + $0x8] sm:$0xff]  ;;  %v930_v16 = vld [vmem:[#allocation3] sm:$0xff]  ;;  %v945_v17 = vld [vmem:[#allocation6 + $0x38] sm:$0xff]  ;;  %s818_s10 = sshll.u32 %s352_s8, 4 }
  0x28   : > { %s820_s28 = sshll.u32 %s1463_s3, 3  ;;  %561 = vmatpush.bf16.msra.mxu1 %v945_v17  ;;  %v944_v18 = vld [vmem:[#allocation6 + $0x30] sm:$0xff]  ;;  %v943_v19 = vld [vmem:[#allocation6 + $0x28] sm:$0xff]  ;;  %v942_v20 = vld [vmem:[#allocation6 + $0x20] sm:$0xff]  ;;  %s685_s21 = scalar_lea.hbm %s1441_s7, %s955_s12 }
  0x29   : > { %s359_s15 = scalar_lea.vmem %s1434_s0, %s820_s28  ;;  %v941_v30 = vld [vmem:[#allocation6 + $0x18] sm:$0xff]  ;;  %v940_v31 = vld [vmem:[#allocation6 + $0x10] sm:$0xff]  ;;  %v939_v32 = vld [vmem:[#allocation6 + $0x8] sm:$0xff]  ;;  %s354_s3 = scalar_lea.vmem [#allocation9], %s818_s10 }
  0x2a   : > { %v369_v3 = vld [vmem:[%s359_s15] sm:$0xff]  ;;  %v370_v8 = vld [vmem:[%s359_s15 + $0x8] sm:$0xff]  ;;  %478 = vmatpush.bf16.msra.mxu0 %v936_v7  ;;  %v953_v35 = vld [vmem:[#allocation8 + $0x30] sm:$0xff]  ;;  %s686_s28 = sshll.u32 %s354_s3, 4  ;;  %s688_s9 = sshll.u32 %s685_s21, 4  ;;  %s687_s28 = int_to_ptr.vmem [resolvable:$true] %s686_s28  ;;  %s689_s9 = int_to_ptr.hbm [resolvable:$true] %s688_s9 }
  0x2b   : > { %374 = vperm.xlu0 %1055, %v369_v3   ;;  %v381_v5 = vadd.s32 16, %v369_v3  ;;  %v393_v6 = vadd.s32 32, %v369_v3  ;;  %v382_v10 = vadd.s32 16, %v370_v8  ;;  %v394_v11 = vadd.s32 32, %v370_v8  ;;  %v938_v33 = vld [vmem:[#allocation6] sm:$0xff]  ;;  %v954_v34 = vld [vmem:[#allocation8 + $0x38] sm:$0xff] }
  0x2c   : > { %562 = vmatpush.bf16.msra.mxu1 %v944_v18  ;;  %656 = vmatpush.bf16.msra.mxu2 %v954_v34  ;;  %v426_v36 = vld [vmem:[%s1436_s2] sm:$0x1]  ;;  %v952_v46 = vld [vmem:[#allocation8 + $0x28] sm:$0xff]  ;;  %v951_v47 = vld [vmem:[#allocation8 + $0x20] sm:$0xff]  ;;  %s673_s14 = scalar_lea.sflag [#allocation5], %s352_s8  ;;  %s1163_s15 = sshra.s32 %s689_s9, 4  ;;  %s1164_s15 = int_to_ptr.hbm [resolvable:$true] %s1163_s15 }
  0x2d   : > { %384 = vperm.xlu1 %1056, %v381_v5   ;;  %396 = vperm.xlu2 %1057, %v393_v6   ;;  %v427_v37 = vunpack.c.l.bf16 %v426_v36  ;;  %v950_v48 = vld [vmem:[#allocation8 + $0x18] sm:$0xff]  ;;  %v949_v49 = vld [vmem:[#allocation8 + $0x10] sm:$0xff]  ;;  %v948_v50 = vld [vmem:[#allocation8 + $0x8] sm:$0xff]  ;;  %s1165_s27 = scalar_lea.hbm %s1164_s15, 16  ;;  %s1169_s20 = scalar_lea.hbm %s1441_s7, 32 }
  0x2e   : > { %479 = vmatpush.bf16.msra.mxu0 %v935_v9  ;;  %v947_v51 = vld [vmem:[#allocation8] sm:$0xff]  ;;  %v510_v52 = vld [vmem:[%s1438_s4] sm:$0x1]  ;;  %p1166_p1 = scmp.ne.s32.totalorder %s1164_s15, %s1165_s27  ;;  %p1170_p5 = scmp.lt.s32.totalorder %s1164_s15, %s1441_s7 }
  0x2f   : > { %v428_v39 = vperm.slane %v427_v37, 0  ;;  %v511_v53 = vunpack.c.l.bf16 %v510_v52  ;;  %v599_v63 = vld [vmem:[%s1440_s6] sm:$0x1]  ;;  %p1171_p6 = scmp.lt.s32.totalorder %s1169_s20, %s1165_s27 }
  0x30   : > { %563 = vmatpush.bf16.msra.mxu1 %v943_v19  ;;  %657 = vmatpush.bf16.msra.mxu2 %v953_v35  ;;  %v600_v0 = vunpack.c.l.bf16 %v599_v63  ;;  %p1167_p2 = pnand %p1166_p1, %p1328_p4 }
  0x31   : > { %v512_v55 = vperm.slane %v511_v53, 0  ;;  %p1172_p7 = por %p1171_p6, %p1170_p5 }
  0x32   : > { %480 = vmatpush.bf16.msra.mxu0 %v934_v12  ;;  %v601_v1 = vperm.slane %v600_v0, 0  ;;  %p1168_p3 = pneg %p1167_p2 }
  0x33   : > { %377 = vperm.xlu0 %1055, %v370_v8  }
  0x34   : > { %564 = vmatpush.bf16.msra.mxu1 %v942_v20  ;;  %658 = vmatpush.bf16.msra.mxu2 %v952_v46  ;;  %p1173_p9 = pnand %p1172_p7, %p1168_p3 }
  0x35   : > { %387 = vperm.xlu1 %1056, %v382_v10   ;;  %399 = vperm.xlu2 %1057, %v394_v11  }
  0x36   : > { %481 = vmatpush.bf16.msra.mxu0 %v933_v13 }
  0x38   : > { %565 = vmatpush.bf16.msra.mxu1 %v941_v30  ;;  %659 = vmatpush.bf16.msra.mxu2 %v951_v47 }
  0x3a   : > { %482 = vmatpush.bf16.msra.mxu0 %v932_v14 }
  0x3b   : > { %1058 = vset.pattern.permute.xlu0 %v1244_v2 }
  0x3c   : > { %566 = vmatpush.bf16.msra.mxu1 %v940_v31  ;;  %660 = vmatpush.bf16.msra.mxu2 %v950_v48 }
  0x3e   : > { %483 = vmatpush.bf16.msra.mxu0 %v931_v15 }
  0x40   : > { %567 = vmatpush.bf16.msra.mxu1 %v939_v32  ;;  %661 = vmatpush.bf16.msra.mxu2 %v949_v49 }
  0x42   : > { %484 = vmatpush.bf16.msra.mxu0 %v930_v16 }
  0x44   : > { %568 = vmatpush.bf16.msra.mxu1 %v938_v33  ;;  %662 = vmatpush.bf16.msra.mxu2 %v948_v50 }
  0x48   : > { %663 = vmatpush.bf16.msra.mxu2 %v947_v51 }
  0x87   : > { %v397_v22 = vpop.permute.xlu2 %396 }
  0x88   : > { %vm401_vm2 = vcmp.eq.s32.totalorder %v372_v24, %v397_v22 }
  0x8f   : > { %v400_v27 = vpop.permute.xlu2 %399 }
  0x90   : > { %vm402_vm7 = vcmp.eq.s32.totalorder %v372_v24, %v400_v27 }
  0x9d   : > { %v375_v23 = vpop.permute.xlu0 %374 }
  0x9e   : > { %vm379_vm0 = vcmp.eq.s32.totalorder %v372_v24, %v375_v23 }
  0x9f   : > { %v385_v25 = vpop.permute.xlu1 %384 }
  0xa0   : > { %vm389_vm1 = vcmp.eq.s32.totalorder %v372_v24, %v385_v25 }
  0xa1   : > { %vm391_vm3 = vmor %vm379_vm0, %vm389_vm1 }
  0xa2   : > { %vm403_vm4 = vmor %vm391_vm3, %vm401_vm2 }
  0xa5   : > { %v378_v26 = vpop.permute.xlu0 %377 }
  0xa6   : > { %vm380_vm5 = vcmp.eq.s32.totalorder %v372_v24, %v378_v26 }
  0xa7   : > { %v388_v28 = vpop.permute.xlu1 %387 }
  0xa8   : > { %vm390_vm6 = vcmp.eq.s32.totalorder %v372_v24, %v388_v28 }
  0xa9   : > { %vm392_vm8 = vmor %vm380_vm5, %vm390_vm6 }
  0xaa   : > { %vm404_vm9 = vmor %vm392_vm8, %vm402_vm7 }
  0xab   : > { %vm855_vm10 = vmpackc.low %vm404_vm9, %vm403_vm4 }
  0xac   : > { %856 = vmatmul.msk.bf16.vlgmr.msra.gmra.mxu0 %vm855_vm10, %v1245_v29 }
 0x129   : > { %v486_v38 = vpop.f32.mrf.mxu0 }
 0x12a   : > { %v487_v40 = vadd.f32 %v486_v38, %v428_v39 }
 0x12c   : > { %v491_v43 = vmax.f32 %v487_v40, 0.0 }
 0x131   : > { %v488_v41 = vpop.f32.mrf.mxu0 }
 0x132   : > { %v489_v42 = vadd.f32 %v488_v41, %v428_v39 }
 0x134   : > { %v492_v44 = vmax.f32 %v489_v42, 0.0 }
 0x136   : > { %v493_v45 = vpack.c.bf16 %v492_v44, %v491_v43 }
 0x138   : > { %569 = vmatmul.bf16.vlgmr.msra.gmra.mxu1 %v493_v45 }
 0x1b5   : > { %v570_v54 = vpop.f32.mrf.mxu1 }
 0x1b6   : > { %v571_v56 = vadd.f32 %v570_v54, %v512_v55 }
 0x1b8   : > { %v575_v59 = vmax.f32 %v571_v56, 0.0 }
 0x1bd   : > { %v572_v57 = vpop.f32.mrf.mxu1 }
 0x1be   : > { %v573_v58 = vadd.f32 %v572_v57, %v512_v55 }
 0x1c0   : > { %v576_v60 = vmax.f32 %v573_v58, 0.0 }
 0x1c2   : > { %v959_v61 = vpack.c.bf16 %v576_v60, %v575_v59 }
 0x1c4   : > { %960 = vst [vmem:[#allocation2] sm:$0xff] %v959_v61  }
 0x1cb   : > { %v946_v62 = vld [vmem:[#allocation2] sm:$0xff] }
 0x1cc   : > { %664 = vmatmul.bf16.vlgmr.msra.gmra.mxu2 %v946_v62 }
 0x24f   : > { %v665_v2 = vpop.f32.mrf.mxu2 }
 0x250   : > { %v666_v3 = vadd.f32 %v665_v2, %v601_v1 }
 0x252   : > { %670 = vst [vmem:[%s354_s3] sm:$0xff] %v666_v3 }
 0x257   : > { %v667_v4 = vpop.f32.mrf.mxu2 }
 0x258   : > { %v668_v5 = vadd.f32 %v667_v4, %v601_v1 }
 0x25a   : > { %671 = vst [vmem:[%s354_s3 + $0x8] sm:$0xff] %v668_v5 }
 0x25b   : > { %1176 = shalt.err (!%p1173_p9)
}
 0x25c   : > { %s1246_s30 = smov 128   ;;  %s1247_s8 = smov 8  }
 0x25d   : > { %973 = dma.vmem_to_hbm [thread:$0]  (%p1328_p4), %s687_s28, 256, %s689_s9, %s673_s14, %s1246_s30, %s1246_s30, %s1247_s8  }
 0x25e PF: > { %p995_p10 = scmp.ge.s32.totalorder %s1235_s29, 2  ;;  %s703_s10 = sand.u32 1, %s1215_s24  }
 0x25f   : > { %s704_s12 = scalar_lea.sflag [#allocation5], %s703_s10 }
 0x260   : > { %p986_p11 = pnand %p995_p10, %p1335_p8 }
 0x262   : > { %p987_p12 = pneg %p986_p11 }
 0x264   : > { %1210 = dma.done.wait (%p987_p12), %s704_s12, 256  }
 0x265   : > { %1212 = vsyncadd (%p987_p12), %s704_s12, 4294967040  ;;  %s22_s29 = sadd.s32 1, %s1235_s29   ;;  %s1454_s17 = sld [smem:[#allocation15_spill]] }
 0x266   : > { %p19_p13 = scmp.ge.s32.totalorder %s22_s29, 4   ;;  %s1455_s27 = sld [smem:[#allocation13_spill]] }
 0x267   : > { %s1456_s28 = sld [smem:[#allocation14_spill]]  ;;  %s1457_s24 = smov %s1219_s25 }
 0x268   : > { %s1458_s25 = smov %s1223_s26  ;;  %21 = sbr.rel (!%p19_p13) target bundleno = 8 (0x8), region = 104 }
 0x26b   : > { %s1459_s26 = smov %s1454_s17 }
 0x26d   :  { %710 = vsyncpa [#allocation4], 1 }
 0x26e   :  { %712 = vsyncpa [#allocation4 + $0x1], 1 }
 0x26f   :  { %713 = vsyncpa [#allocation7], 1 }
 0x270   :  { %714 = vsyncpa [#allocation5], 1 }
 0x271   :  { %716 = vsyncpa [#allocation5 + $0x1], 1 }

</bundles_post_ra>
